<compile_context>
chip_gen: v6e
topology: v6e:2x2x1
jax: 0.10.0
libtpu: 0.0.40
codegen_flags: <defaults>
</compile_context>

<pallas_src>
import functools

import jax
import jax.numpy as jnp
from jax import lax
from jax.experimental import pallas as pl
from jax.experimental.pallas import tpu as pltpu

_EPS = 1e-5                         # nn.BatchNorm2d and nn.LayerNorm default eps
_VMEM_LIMIT = 32 * 1024 * 1024      # explicit scoped-VMEM cap (safe on v5e/v6e/v7x)


def _round_up(x, m):
    return (x + m - 1) // m * m


def _pick_row_tile(rows, cols, bytes_per_el=4, budget=4 * 1024 * 1024, max_rows=512):
    """Row tile that keeps one (tile, cols) input block under `budget` bytes
    (the pipeline double-buffers it), capped at max_rows, multiple of 8 sublanes."""
    fit = max(8, (budget // max(1, cols * bytes_per_el)) // 8 * 8)
    return int(min(max_rows, fit, _round_up(rows, 8)))


# ---------------- Pallas pass 1: BatchNorm2d batch statistics (phase 1 of 2) ----------
def _bn_stats_kernel(z_ref, s_ref):
    """Accumulate per-channel sum (row 0) and sum-of-squares (row 1) across row tiles."""
    @pl.when(pl.program_id(0) == 0)
    def _init():
        s_ref[...] = jnp.zeros_like(s_ref)

    z = z_ref[...].astype(jnp.float32)          # f32 accumulation even for bf16 input
    s_ref[0:1, :] += jnp.sum(z, axis=0, keepdims=True)
    s_ref[1:2, :] += jnp.sum(z * z, axis=0, keepdims=True)


# ---------------- Pallas pass 2: fused BN-apply + ReLU + conv2 + Sigmoid + MLP --------
def _fused_tail_kernel(p_ref, scale_ref, shift_ref, cw_ref, cb_ref,
                       w1_ref, b1_ref, w2_ref, b2_ref, g_ref, bln_ref,
                       w3_ref, b3_ref, o_ref, conv_buf,
                       *, batch, spatial, row_tile, mm_dtype):
    i = pl.program_id(0)

    # BatchNorm apply (precomputed per-channel scale/shift tiled to the patch column
    # order) + ReLU.  Element-wise math kept in f32.
    h = jnp.maximum(p_ref[...].astype(jnp.float32) * scale_ref[...] + shift_ref[...], 0.0)

    # conv2: kernel == stride, so each output pixel is one patch row -> one matmul.
    z = jnp.dot(h.astype(mm_dtype), cw_ref[...], preferred_element_type=jnp.float32)
    z = z + cb_ref[...]
    r0 = pl.multiple_of(i * row_tile, row_tile)
    conv_buf[pl.ds(r0, row_tile), :] = jax.nn.sigmoid(z)   # stays in VMEM, never HBM

    # On the last tile: per-slot MLP (fc1 -> relu -> fc2 -> LayerNorm -> relu -> fc3).
    @pl.when(i == pl.num_programs(0) - 1)
    def _mlp():
        # (B*H2*W2, S) -> (B*S, H2*W2): tiny, done with per-batch 2-D transposes in
        # VMEM.  (For very large batch this stays a small unrolled loop; at model
        # sizes B*S and H2*W2 are tiny so it is latency-, not throughput-, relevant.)
        parts = [conv_buf[b * spatial:(b + 1) * spatial, :].T for b in range(batch)]
        h2 = jnp.concatenate(parts, axis=0)                              # (B*S, H2*W2)

        x1 = jnp.dot(h2.astype(mm_dtype), w1_ref[...],
                     preferred_element_type=jnp.float32) + b1_ref[...]
        x1 = jnp.maximum(x1, 0.0)
        x2 = jnp.dot(x1.astype(mm_dtype), w2_ref[...],
                     preferred_element_type=jnp.float32) + b2_ref[...]
        mu = jnp.mean(x2, axis=-1, keepdims=True)
        var = jnp.mean((x2 - mu) ** 2, axis=-1, keepdims=True)  # biased, like nn.LayerNorm
        x2 = (x2 - mu) * lax.rsqrt(var + _EPS) * g_ref[...] + bln_ref[...]
        x2 = jnp.maximum(x2, 0.0)
        o_ref[...] = jnp.dot(x2.astype(mm_dtype), w3_ref[...],
                             preferred_element_type=jnp.float32) + b3_ref[...]


def init_params(key, input_dim, hidden_dim, num_slots, slot_dim, width_height):
    """Deterministic synthetic parameters matching EncoderCNNMedium's shapes."""
    wh = (width_height[0] // 5) * (width_height[1] // 5)   # mlp_encoder.input_dim
    ks = jax.random.split(key, 8)
    p = {}
    # conv weights as (kh, kw, Cin, Cout) (HWIO)
    p["w1"] = 0.1 * jax.random.normal(ks[0], (9, 9, input_dim, hidden_dim), jnp.float32)
    p["b1"] = 0.01 * jax.random.normal(ks[1], (1, hidden_dim), jnp.float32)
    p["bn_gamma"] = jnp.ones((1, hidden_dim), jnp.float32)   # BatchNorm2d affine init
    p["bn_beta"] = jnp.zeros((1, hidden_dim), jnp.float32)
    p["w2"] = 0.1 * jax.random.normal(ks[2], (5, 5, hidden_dim, num_slots), jnp.float32)
    p["b2"] = 0.01 * jax.random.normal(ks[3], (1, num_slots), jnp.float32)
    # EncoderMLP params (Linear weights stored as (in, out))
    p["fc1_w"] = 0.1 * jax.random.normal(ks[4], (wh, hidden_dim), jnp.float32)
    p["fc1_b"] = 0.01 * jax.random.normal(ks[5], (1, hidden_dim), jnp.float32)
    p["fc2_w"] = 0.1 * jax.random.normal(ks[6], (hidden_dim, hidden_dim), jnp.float32)
    p["fc2_b"] = jnp.zeros((1, hidden_dim), jnp.float32)
    p["ln_gamma"] = jnp.ones((1, hidden_dim), jnp.float32)   # LayerNorm default init
    p["ln_beta"] = jnp.zeros((1, hidden_dim), jnp.float32)
    p["fc3_w"] = 0.1 * jax.random.normal(ks[7], (hidden_dim, slot_dim), jnp.float32)
    p["fc3_b"] = jnp.zeros((1, slot_dim), jnp.float32)
    return p


@functools.partial(jax.jit, static_argnames=("num_slots", "slot_dim", "bf16_matmul"))
def encoder_cnn_medium(x_nchw, params, *, num_slots, slot_dim, bf16_matmul=False):
    B = x_nchw.shape[0]
    hidden = params["w1"].shape[-1]
    mm_dtype = jnp.bfloat16 if bf16_matmul else jnp.float32
    x = jnp.transpose(x_nchw, (0, 2, 3, 1)).astype(jnp.float32)   # NCHW -> NHWC

    # --- conv1 on the MXU via XLA (review option (b)): no 81x im2col expansion ---
    dn = ("NHWC", "HWIO", "NHWC")
    if bf16_matmul:
        z1 = lax.conv_general_dilated(
            x.astype(jnp.bfloat16), params["w1"].astype(jnp.bfloat16),
            (1, 1), ((4, 4), (4, 4)), dimension_numbers=dn,
            preferred_element_type=jnp.float32)
    else:
        z1 = lax.conv_general_dilated(
            x, params["w1"], (1, 1), ((4, 4), (4, 4)),
            dimension_numbers=dn, precision=lax.Precision.HIGHEST)
    z1 = z1 + params["b1"].reshape(1, 1, 1, -1)                   # conv1 bias
    _, H, W, _ = z1.shape
    act = z1.astype(mm_dtype)    # single activation array (bf16 halves its HBM traffic)
    ebytes = jnp.dtype(mm_dtype).itemsize

    # --- Pallas pass 1: BatchNorm batch statistics (row-tiled reduction) ---
    R1 = B * H * W
    z2d = act.reshape(R1, hidden)
    tr1 = _pick_row_tile(R1, hidden, bytes_per_el=ebytes)
    R1p = _round_up(R1, tr1)
    if R1p != R1:
        z2d = jnp.pad(z2d, ((0, R1p - R1), (0, 0)))   # zero rows add nothing to sums
    stats = pl.pallas_call(
        _bn_stats_kernel,
        out_shape=jax.ShapeDtypeStruct((8, hidden), jnp.float32),
        grid=(R1p // tr1,),
        in_specs=[pl.BlockSpec((tr1, hidden), lambda i: (i, 0))],
        out_specs=pl.BlockSpec((8, hidden), lambda i: (0, 0)),
        compiler_params=pltpu.CompilerParams(
            dimension_semantics=("arbitrary",),       # cross-tile reduction
            vmem_limit_bytes=_VMEM_LIMIT),
    )(z2d)

    # BN finalize (O(hidden) scalar math): fold mean/var/gamma/beta into scale/shift.
    # TODO(synk): BatchNorm2d running_mean/running_var in-place updates (training-time
    # side effect) are not modeled; normalization uses batch stats as in train mode.
    n = jnp.float32(R1)
    mean = stats[0] / n
    var = stats[1] / n - mean * mean                  # biased variance (BatchNorm2d)
    scale = params["bn_gamma"].reshape(-1) * lax.rsqrt(var + _EPS)
    shift = params["bn_beta"].reshape(-1) - mean * scale

    # --- Pallas pass 2: fused BN-apply + ReLU + conv2 + Sigmoid + per-slot MLP ---
    H2, W2 = H // 5, W // 5
    J = H2 * W2                                       # mlp_encoder.input_dim
    K2 = 25 * hidden
    # conv2 kernel == stride => patches are a pure permutation of z1 (no expansion).
    patches = (act.reshape(B, H2, 5, W2, 5, hidden)
                  .transpose(0, 1, 3, 2, 4, 5)
                  .reshape(B * J, K2))
    scale_t = jnp.tile(scale, 25).reshape(1, K2).astype(jnp.float32)
    shift_t = jnp.tile(shift, 25).reshape(1, K2).astype(jnp.float32)

    R2 = B * J
    tr2 = _pick_row_tile(R2, K2, bytes_per_el=ebytes)
    R2p = _round_up(R2, tr2)
    if R2p != R2:
        patches = jnp.pad(patches, ((0, R2p - R2), (0, 0)))   # extra rows never read by MLP

    cw = params["w2"].reshape(K2, num_slots).astype(mm_dtype)   # (di, dj, c) column order
    cb = params["b2"].reshape(1, num_slots).astype(jnp.float32)
    w1m = params["fc1_w"].astype(mm_dtype)
    w2m = params["fc2_w"].astype(mm_dtype)
    w3m = params["fc3_w"].astype(mm_dtype)

    kernel = functools.partial(_fused_tail_kernel, batch=B, spatial=J,
                               row_tile=tr2, mm_dtype=mm_dtype)

    def full(shape):
        return pl.BlockSpec(shape, lambda i: (0, 0))   # small resident operand

    out = pl.pallas_call(
        kernel,
        out_shape=jax.ShapeDtypeStruct((B * num_slots, slot_dim), jnp.float32),
        grid=(R2p // tr2,),
        in_specs=[pl.BlockSpec((tr2, K2), lambda i: (i, 0)),     # patch row tiles
                  full((1, K2)), full((1, K2)),                  # BN scale / shift
                  full((K2, num_slots)), full((1, num_slots)),   # conv2 w / b
                  full((J, hidden)), full((1, hidden)),          # fc1
                  full((hidden, hidden)), full((1, hidden)),     # fc2
                  full((1, hidden)), full((1, hidden)),          # LayerNorm gamma/beta
                  full((hidden, slot_dim)), full((1, slot_dim))],  # fc3
        out_specs=pl.BlockSpec((B * num_slots, slot_dim), lambda i: (0, 0)),
        scratch_shapes=[pltpu.VMEM((R2p, num_slots), jnp.float32)],
        compiler_params=pltpu.CompilerParams(
            dimension_semantics=("arbitrary",),   # conv2 output accumulated in VMEM scratch
            vmem_limit_bytes=_VMEM_LIMIT),
    )(patches, scale_t, shift_t, cw, cb, w1m, params["fc1_b"],
      w2m, params["fc2_b"], params["ln_gamma"], params["ln_beta"],
      w3m, params["fc3_b"])

    return out.reshape(B, num_slots, slot_dim)


def _reference(x_nchw, params, num_slots, slot_dim):
    """Pure-JAX reference of the same forward pass (for correctness check)."""
    hi = lax.Precision.HIGHEST
    x = jnp.transpose(x_nchw, (0, 2, 3, 1)).astype(jnp.float32)
    dn = ("NHWC", "HWIO", "NHWC")
    z = lax.conv_general_dilated(x, params["w1"], (1, 1), ((4, 4), (4, 4)),
                                 dimension_numbers=dn, precision=hi)
    z = z + params["b1"].reshape(1, 1, 1, -1)
    mean = jnp.mean(z, axis=(0, 1, 2), keepdims=True)
    var = jnp.mean((z - mean) ** 2, axis=(0, 1, 2), keepdims=True)
    z = (z - mean) * lax.rsqrt(var + _EPS)
    z = z * params["bn_gamma"].reshape(1, 1, 1, -1) + params["bn_beta"].reshape(1, 1, 1, -1)
    h = jnp.maximum(z, 0.0)
    z2 = lax.conv_general_dilated(h, params["w2"], (5, 5), "VALID",
                                  dimension_numbers=dn, precision=hi)
    z2 = z2 + params["b2"].reshape(1, 1, 1, -1)
    h2 = jax.nn.sigmoid(z2)
    B, H2, W2, _ = h2.shape
    h2 = h2.transpose(0, 3, 1, 2).reshape(B * num_slots, H2 * W2)
    h = jnp.maximum(jnp.dot(h2, params["fc1_w"], precision=hi) + params["fc1_b"], 0.0)
    h = jnp.dot(h, params["fc2_w"], precision=hi) + params["fc2_b"]
    m = jnp.mean(h, axis=-1, keepdims=True)
    v = jnp.mean((h - m) ** 2, axis=-1, keepdims=True)
    h = (h - m) * lax.rsqrt(v + _EPS) * params["ln_gamma"] + params["ln_beta"]
    h = jnp.maximum(h, 0.0)
    out = jnp.dot(h, params["fc3_w"], precision=hi) + params["fc3_b"]
    return out.reshape(B, num_slots, slot_dim)


if __name__ == "__main__":
    # Small shapes consistent with the module: width/height must be divisible by 5.
    B, C_in, H, W = 2, 3, 10, 10
    hidden_dim, num_slots, slot_dim = 32, 5, 4

    key = jax.random.PRNGKey(0)
    kx, kp = jax.random.split(key)
    x = jax.random.normal(kx, (B, C_in, H, W), dtype=jnp.float32)   # NCHW like PyTorch
    params = init_params(kp, C_in, hidden_dim, num_slots, slot_dim, (H, W))

    # f32 path (accuracy-checked against a pure-JAX reference).
    out = encoder_cnn_medium(x, params, num_slots=num_slots, slot_dim=slot_dim)
    out = jax.block_until_ready(out)
    assert out.shape == (B, num_slots, slot_dim), out.shape
    assert bool(jnp.all(jnp.isfinite(out)))

    ref = _reference(x, params, num_slots, slot_dim)
    assert bool(jnp.allclose(out, ref, atol=2e-3, rtol=2e-3)), (
        float(jnp.max(jnp.abs(out - ref))))

    # bf16-MXU path (v6e/v7x feedback): bf16 matmul operands, f32 accumulation,
    # f32 element-wise math.  Checked loosely against the f32 reference.
    out_bf16 = encoder_cnn_medium(x, params, num_slots=num_slots, slot_dim=slot_dim,
                                  bf16_matmul=True)
    out_bf16 = jax.block_until_ready(out_bf16)
    assert out_bf16.shape == (B, num_slots, slot_dim)
    assert bool(jnp.all(jnp.isfinite(out_bf16)))
    assert float(jnp.max(jnp.abs(out_bf16 - ref))) < 1e-1

    print("KERNEL_OK")
</pallas_src>

<mosaic_0001>
module attributes {stable_mosaic.version = 11 : i64} {
  func.func @_bn_stats_kernel(%arg0: i32, %arg1: memref<200x32xf32, #tpu.memory_space<vmem>>, %arg2: memref<8x32xf32, #tpu.memory_space<vmem>>) attributes {dimension_semantics = [#tpu.dimension_semantics<arbitrary>], iteration_bounds = array<i64: 1>, scalar_prefetch = 0 : i64, scratch_operands = 0 : i64, tpu.core_type = #tpu.core_type<tc>, window_params = [{transform_indices = @transform_0, window_bounds = array<i64: 200, 32>}, {pipeline_mode = #tpu.pipeline_mode<synchronous>, transform_indices = @transform_1, window_bounds = array<i64: 8, 32>}]} {
    %c0_i32 = arith.constant 0 : i32
    %0 = arith.cmpi eq, %arg0, %c0_i32 : i32
    %1 = arith.extui %0 : i1 to i32
    %c0_i32_0 = arith.constant 0 : i32
    %2 = arith.cmpi ne, %1, %c0_i32_0 : i32
    scf.if %2 {
      %cst_10 = arith.constant 0.000000e+00 : f32
      %15 = vector.broadcast %cst_10 : f32 to vector<8x32xf32>
      %c0_11 = arith.constant 0 : index
      %c0_12 = arith.constant 0 : index
      %16 = vector.load %arg2[%c0_11, %c0_12] : memref<8x32xf32, #tpu.memory_space<vmem>>, vector<8x32xf32>
      tpu.vector_store %arg2[%c0_11, %c0_12], %15 {strides = array<i32>} : memref<8x32xf32, #tpu.memory_space<vmem>>, vector<8x32xf32>,
    } else {
    }
    %c0 = arith.constant 0 : index
    %c0_1 = arith.constant 0 : index
    %3 = vector.load %arg1[%c0, %c0_1] : memref<200x32xf32, #tpu.memory_space<vmem>>, vector<200x32xf32>
    %c0_2 = arith.constant 0 : index
    %c0_3 = arith.constant 0 : index
    %4 = vector.load %arg2[%c0_2, %c0_3] : memref<8x32xf32, #tpu.memory_space<vmem>>, vector<1x32xf32>
    %cst = arith.constant dense<0.000000e+00> : vector<32xf32>
    %5 = vector.multi_reduction <add>, %3, %cst [0] : vector<200x32xf32> to vector<32xf32>
    %6 = vector.shape_cast %5 : vector<32xf32> to vector<1x32xf32>
    %7 = arith.addf %4, %6 : vector<1x32xf32>
    %c0_4 = arith.constant 0 : index
    %c0_5 = arith.constant 0 : index
    %8 = vector.load %arg2[%c0_4, %c0_5] : memref<8x32xf32, #tpu.memory_space<vmem>>, vector<1x32xf32>
    tpu.vector_store %arg2[%c0_4, %c0_5], %7 {strides = array<i32>} : memref<8x32xf32, #tpu.memory_space<vmem>>, vector<1x32xf32>,
    %c1 = arith.constant 1 : index
    %c0_6 = arith.constant 0 : index
    %9 = vector.load %arg2[%c1, %c0_6] : memref<8x32xf32, #tpu.memory_space<vmem>>, vector<1x32xf32>
    %10 = arith.mulf %3, %3 : vector<200x32xf32>
    %cst_7 = arith.constant dense<0.000000e+00> : vector<32xf32>
    %11 = vector.multi_reduction <add>, %10, %cst_7 [0] : vector<200x32xf32> to vector<32xf32>
    %12 = vector.shape_cast %11 : vector<32xf32> to vector<1x32xf32>
    %13 = arith.addf %9, %12 : vector<1x32xf32>
    %c1_8 = arith.constant 1 : index
    %c0_9 = arith.constant 0 : index
    %14 = vector.load %arg2[%c1_8, %c0_9] : memref<8x32xf32, #tpu.memory_space<vmem>>, vector<1x32xf32>
    tpu.vector_store %arg2[%c1_8, %c0_9], %13 {strides = array<i32>} : memref<8x32xf32, #tpu.memory_space<vmem>>, vector<1x32xf32>,
    return
  }
  func.func @transform_0(%arg0: i32) -> (i32, i32) {
    %c0_i32 = arith.constant 0 : i32
    %c0_i32_0 = arith.constant 0 : i32
    return %arg0, %c0_i32 : i32, i32
  }
  func.func @transform_1(%arg0: i32) -> (i32, i32) {
    %c0_i32 = arith.constant 0 : i32
    %c0_i32_0 = arith.constant 0 : i32
    %c0_i32_1 = arith.constant 0 : i32
    return %c0_i32, %c0_i32_0 : i32, i32
  }
}

module attributes {stable_mosaic.version = 11 : i64} {
  func.func @_fused_tail_kernel(%arg0: i32, %arg1: memref<8x800xf32, #tpu.memory_space<vmem>>, %arg2: memref<1x800xf32, #tpu.memory_space<vmem>>, %arg3: memref<1x800xf32, #tpu.memory_space<vmem>>, %arg4: memref<800x5xf32, #tpu.memory_space<vmem>>, %arg5: memref<1x5xf32, #tpu.memory_space<vmem>>, %arg6: memref<4x32xf32, #tpu.memory_space<vmem>>, %arg7: memref<1x32xf32, #tpu.memory_space<vmem>>, %arg8: memref<32x32xf32, #tpu.memory_space<vmem>>, %arg9: memref<1x32xf32, #tpu.memory_space<vmem>>, %arg10: memref<1x32xf32, #tpu.memory_space<vmem>>, %arg11: memref<1x32xf32, #tpu.memory_space<vmem>>, %arg12: memref<32x4xf32, #tpu.memory_space<vmem>>, %arg13: memref<1x4xf32, #tpu.memory_space<vmem>>, %arg14: memref<10x4xf32, #tpu.memory_space<vmem>>, %arg15: memref<8x5xf32, #tpu.memory_space<vmem>>) attributes {dimension_semantics = [#tpu.dimension_semantics<arbitrary>], iteration_bounds = array<i64: 1>, scalar_prefetch = 0 : i64, scratch_operands = 1 : i64, tpu.core_type = #tpu.core_type<tc>, window_params = [{transform_indices = @transform_0, window_bounds = array<i64: 8, 800>}, {pipeline_mode = #tpu.pipeline_mode<synchronous>, transform_indices = @transform_1, window_bounds = array<i64: 1, 800>}, {pipeline_mode = #tpu.pipeline_mode<synchronous>, transform_indices = @transform_2, window_bounds = array<i64: 1, 800>}, {pipeline_mode = #tpu.pipeline_mode<synchronous>, transform_indices = @transform_3, window_bounds = array<i64: 800, 5>}, {pipeline_mode = #tpu.pipeline_mode<synchronous>, transform_indices = @transform_4, window_bounds = array<i64: 1, 5>}, {pipeline_mode = #tpu.pipeline_mode<synchronous>, transform_indices = @transform_5, window_bounds = array<i64: 4, 32>}, {pipeline_mode = #tpu.pipeline_mode<synchronous>, transform_indices = @transform_6, window_bounds = array<i64: 1, 32>}, {pipeline_mode = #tpu.pipeline_mode<synchronous>, transform_indices = @transform_7, window_bounds = array<i64: 32, 32>}, {pipeline_mode = #tpu.pipeline_mode<synchronous>, transform_indices = @transform_8, window_bounds = array<i64: 1, 32>}, {pipeline_mode = #tpu.pipeline_mode<synchronous>, transform_indices = @transform_9, window_bounds = array<i64: 1, 32>}, {pipeline_mode = #tpu.pipeline_mode<synchronous>, transform_indices = @transform_10, window_bounds = array<i64: 1, 32>}, {pipeline_mode = #tpu.pipeline_mode<synchronous>, transform_indices = @transform_11, window_bounds = array<i64: 32, 4>}, {pipeline_mode = #tpu.pipeline_mode<synchronous>, transform_indices = @transform_12, window_bounds = array<i64: 1, 4>}, {pipeline_mode = #tpu.pipeline_mode<synchronous>, transform_indices = @transform_13, window_bounds = array<i64: 10, 4>}]} {
    %c0 = arith.constant 0 : index
    %c0_0 = arith.constant 0 : index
    %0 = vector.load %arg1[%c0, %c0_0] : memref<8x800xf32, #tpu.memory_space<vmem>>, vector<8x800xf32>
    %c0_1 = arith.constant 0 : index
    %c0_2 = arith.constant 0 : index
    %1 = vector.load %arg2[%c0_1, %c0_2] : memref<1x800xf32, #tpu.memory_space<vmem>>, vector<1x800xf32>
    %2 = vector.broadcast %1 : vector<1x800xf32> to vector<8x800xf32>
    %3 = arith.mulf %0, %2 : vector<8x800xf32>
    %c0_3 = arith.constant 0 : index
    %c0_4 = arith.constant 0 : index
    %4 = vector.load %arg3[%c0_3, %c0_4] : memref<1x800xf32, #tpu.memory_space<vmem>>, vector<1x800xf32>
    %5 = vector.broadcast %4 : vector<1x800xf32> to vector<8x800xf32>
    %6 = arith.addf %3, %5 : vector<8x800xf32>
    %cst = arith.constant 0.000000e+00 : f32
    %7 = vector.broadcast %cst : f32 to vector<8x800xf32>
    %8 = arith.maximumf %6, %7 : vector<8x800xf32>
    %c0_5 = arith.constant 0 : index
    %c0_6 = arith.constant 0 : index
    %9 = vector.load %arg4[%c0_5, %c0_6] : memref<800x5xf32, #tpu.memory_space<vmem>>, vector<800x5xf32>
    %cst_7 = arith.constant dense<0.000000e+00> : vector<8x5xf32>
    %10 = tpu.matmul %8, %9, %cst_7 {dimension_numbers = #tpu.dot_dimension_numbers<[1], [0], [0], [1], [0, 0, 1, 1], [], []>} : vector<8x800xf32>, vector<800x5xf32>, vector<8x5xf32> -> vector<8x5xf32>
    %c0_8 = arith.constant 0 : index
    %c0_9 = arith.constant 0 : index
    %11 = vector.load %arg5[%c0_8, %c0_9] : memref<1x5xf32, #tpu.memory_space<vmem>>, vector<1x5xf32>
    %12 = vector.broadcast %11 : vector<1x5xf32> to vector<8x5xf32>
    %13 = arith.addf %10, %12 : vector<8x5xf32>
    %c8_i32 = arith.constant 8 : i32
    %14 = arith.muli %arg0, %c8_i32 : i32
    %15 = tpu.assume_multiple %14, 8 : i32
    %16 = arith.negf %13 : vector<8x5xf32>
    %17 = math.exp %16 : vector<8x5xf32>
    %cst_10 = arith.constant 1.000000e+00 : f32
    %18 = vector.broadcast %cst_10 : f32 to vector<8x5xf32>
    %19 = arith.addf %18, %17 : vector<8x5xf32>
    %20 = arith.divf %18, %19 : vector<8x5xf32>
    %21 = arith.index_cast %15 : i32 to index
    %c0_11 = arith.constant 0 : index
    %22 = vector.load %arg15[%21, %c0_11] : memref<8x5xf32, #tpu.memory_space<vmem>>, vector<8x5xf32>
    tpu.vector_store %arg15[%21, %c0_11], %20 {strides = array<i32>} : memref<8x5xf32, #tpu.memory_space<vmem>>, vector<8x5xf32>,
    %c0_i32 = arith.constant 0 : i32
    %23 = arith.cmpi eq, %arg0, %c0_i32 : i32
    %24 = arith.extui %23 : i1 to i32
    %c0_i32_12 = arith.constant 0 : i32
    %25 = arith.cmpi ne, %24, %c0_i32_12 : i32
    scf.if %25 {
      %c0_13 = arith.constant 0 : index
      %c0_14 = arith.constant 0 : index
      %26 = vector.load %arg15[%c0_13, %c0_14] : memref<8x5xf32, #tpu.memory_space<vmem>>, vector<4x5xf32>
      %27 = tpu.transpose %26, [1, 0] : vector<4x5xf32> -> vector<5x4xf32>
      %c4 = arith.constant 4 : index
      %c0_15 = arith.constant 0 : index
      %28 = vector.load %arg15[%c4, %c0_15] : memref<8x5xf32, #tpu.memory_space<vmem>>, vector<4x5xf32>
      %29 = tpu.transpose %28, [1, 0] : vector<4x5xf32> -> vector<5x4xf32>
      %30 = tpu.concatenate %27, %29 in 0 : vector<5x4xf32>, vector<5x4xf32> -> vector<10x4xf32>
      %c0_16 = arith.constant 0 : index
      %c0_17 = arith.constant 0 : index
      %31 = vector.load %arg6[%c0_16, %c0_17] : memref<4x32xf32, #tpu.memory_space<vmem>>, vector<4x32xf32>
      %cst_18 = arith.constant dense<0.000000e+00> : vector<10x32xf32>
      %32 = tpu.matmul %30, %31, %cst_18 {dimension_numbers = #tpu.dot_dimension_numbers<[1], [0], [0], [1], [0, 0, 1, 1], [], []>} : vector<10x4xf32>, vector<4x32xf32>, vector<10x32xf32> -> vector<10x32xf32>
      %c0_19 = arith.constant 0 : index
      %c0_20 = arith.constant 0 : index
      %33 = vector.load %arg7[%c0_19, %c0_20] : memref<1x32xf32, #tpu.memory_space<vmem>>, vector<1x32xf32>
      %34 = vector.broadcast %33 : vector<1x32xf32> to vector<10x32xf32>
      %35 = arith.addf %32, %34 : vector<10x32xf32>
      %cst_21 = arith.constant 0.000000e+00 : f32
      %36 = vector.broadcast %cst_21 : f32 to vector<10x32xf32>
      %37 = arith.maximumf %35, %36 : vector<10x32xf32>
      %c0_22 = arith.constant 0 : index
      %c0_23 = arith.constant 0 : index
      %38 = vector.load %arg8[%c0_22, %c0_23] : memref<32x32xf32, #tpu.memory_space<vmem>>, vector<32x32xf32>
      %cst_24 = arith.constant dense<0.000000e+00> : vector<10x32xf32>
      %39 = tpu.matmul %37, %38, %cst_24 {dimension_numbers = #tpu.dot_dimension_numbers<[1], [0], [0], [1], [0, 0, 1, 1], [], []>} : vector<10x32xf32>, vector<32x32xf32>, vector<10x32xf32> -> vector<10x32xf32>
      %c0_25 = arith.constant 0 : index
      %c0_26 = arith.constant 0 : index
      %40 = vector.load %arg9[%c0_25, %c0_26] : memref<1x32xf32, #tpu.memory_space<vmem>>, vector<1x32xf32>
      %41 = vector.broadcast %40 : vector<1x32xf32> to vector<10x32xf32>
      %42 = arith.addf %39, %41 : vector<10x32xf32>
      %cst_27 = arith.constant dense<0.000000e+00> : vector<10xf32>
      %43 = vector.multi_reduction <add>, %42, %cst_27 [1] : vector<10x32xf32> to vector<10xf32>
      %44 = vector.shape_cast %43 : vector<10xf32> to vector<10x1xf32>
      %cst_28 = arith.constant 3.200000e+01 : f32
      %45 = vector.broadcast %cst_28 : f32 to vector<10x1xf32>
      %46 = arith.divf %44, %45 : vector<10x1xf32>
      %47 = vector.broadcast %46 : vector<10x1xf32> to vector<10x32xf32>
      %48 = arith.subf %42, %47 : vector<10x32xf32>
      %49 = arith.mulf %48, %48 : vector<10x32xf32>
      %cst_29 = arith.constant dense<0.000000e+00> : vector<10xf32>
      %50 = vector.multi_reduction <add>, %49, %cst_29 [1] : vector<10x32xf32> to vector<10xf32>
      %51 = vector.shape_cast %50 : vector<10xf32> to vector<10x1xf32>
      %cst_30 = arith.constant 3.200000e+01 : f32
      %52 = vector.broadcast %cst_30 : f32 to vector<10x1xf32>
      %53 = arith.divf %51, %52 : vector<10x1xf32>
      %54 = vector.broadcast %46 : vector<10x1xf32> to vector<10x32xf32>
      %55 = arith.subf %42, %54 : vector<10x32xf32>
      %cst_31 = arith.constant 9.99999974E-6 : f32
      %56 = vector.broadcast %cst_31 : f32 to vector<10x1xf32>
      %57 = arith.addf %53, %56 : vector<10x1xf32>
      %58 = math.rsqrt %57 : vector<10x1xf32>
      %59 = vector.broadcast %58 : vector<10x1xf32> to vector<10x32xf32>
      %60 = arith.mulf %55, %59 : vector<10x32xf32>
      %c0_32 = arith.constant 0 : index
      %c0_33 = arith.constant 0 : index
      %61 = vector.load %arg10[%c0_32, %c0_33] : memref<1x32xf32, #tpu.memory_space<vmem>>, vector<1x32xf32>
      %62 = vector.broadcast %61 : vector<1x32xf32> to vector<10x32xf32>
      %63 = arith.mulf %60, %62 : vector<10x32xf32>
      %c0_34 = arith.constant 0 : index
      %c0_35 = arith.constant 0 : index
      %64 = vector.load %arg11[%c0_34, %c0_35] : memref<1x32xf32, #tpu.memory_space<vmem>>, vector<1x32xf32>
      %65 = vector.broadcast %64 : vector<1x32xf32> to vector<10x32xf32>
      %66 = arith.addf %63, %65 : vector<10x32xf32>
      %cst_36 = arith.constant 0.000000e+00 : f32
      %67 = vector.broadcast %cst_36 : f32 to vector<10x32xf32>
      %68 = arith.maximumf %66, %67 : vector<10x32xf32>
      %c0_37 = arith.constant 0 : index
      %c0_38 = arith.constant 0 : index
      %69 = vector.load %arg12[%c0_37, %c0_38] : memref<32x4xf32, #tpu.memory_space<vmem>>, vector<32x4xf32>
      %cst_39 = arith.constant dense<0.000000e+00> : vector<10x4xf32>
      %70 = tpu.matmul %68, %69, %cst_39 {dimension_numbers = #tpu.dot_dimension_numbers<[1], [0], [0], [1], [0, 0, 1, 1], [], []>} : vector<10x32xf32>, vector<32x4xf32>, vector<10x4xf32> -> vector<10x4xf32>
      %c0_40 = arith.constant 0 : index
      %c0_41 = arith.constant 0 : index
      %71 = vector.load %arg13[%c0_40, %c0_41] : memref<1x4xf32, #tpu.memory_space<vmem>>, vector<1x4xf32>
      %72 = vector.broadcast %71 : vector<1x4xf32> to vector<10x4xf32>
      %73 = arith.addf %70, %72 : vector<10x4xf32>
      %c0_42 = arith.constant 0 : index
      %c0_43 = arith.constant 0 : index
      %74 = vector.load %arg14[%c0_42, %c0_43] : memref<10x4xf32, #tpu.memory_space<vmem>>, vector<10x4xf32>
      tpu.vector_store %arg14[%c0_42, %c0_43], %73 {strides = array<i32>} : memref<10x4xf32, #tpu.memory_space<vmem>>, vector<10x4xf32>,
    } else {
    }
    return
  }
  func.func @transform_0(%arg0: i32) -> (i32, i32) {
    %c0_i32 = arith.constant 0 : i32
    %c0_i32_0 = arith.constant 0 : i32
    return %arg0, %c0_i32 : i32, i32
  }
  func.func @transform_1(%arg0: i32) -> (i32, i32) {
    %c0_i32 = arith.constant 0 : i32
    %c0_i32_0 = arith.constant 0 : i32
    %c0_i32_1 = arith.constant 0 : i32
    return %c0_i32, %c0_i32_0 : i32, i32
  }
  func.func @transform_2(%arg0: i32) -> (i32, i32) {
    %c0_i32 = arith.constant 0 : i32
    %c0_i32_0 = arith.constant 0 : i32
    %c0_i32_1 = arith.constant 0 : i32
    return %c0_i32, %c0_i32_0 : i32, i32
  }
  func.func @transform_3(%arg0: i32) -> (i32, i32) {
    %c0_i32 = arith.constant 0 : i32
    %c0_i32_0 = arith.constant 0 : i32
    %c0_i32_1 = arith.constant 0 : i32
    return %c0_i32, %c0_i32_0 : i32, i32
  }
  func.func @transform_4(%arg0: i32) -> (i32, i32) {
    %c0_i32 = arith.constant 0 : i32
    %c0_i32_0 = arith.constant 0 : i32
    %c0_i32_1 = arith.constant 0 : i32
    return %c0_i32, %c0_i32_0 : i32, i32
  }
  func.func @transform_5(%arg0: i32) -> (i32, i32) {
    %c0_i32 = arith.constant 0 : i32
    %c0_i32_0 = arith.constant 0 : i32
    %c0_i32_1 = arith.constant 0 : i32
    return %c0_i32, %c0_i32_0 : i32, i32
  }
  func.func @transform_6(%arg0: i32) -> (i32, i32) {
    %c0_i32 = arith.constant 0 : i32
    %c0_i32_0 = arith.constant 0 : i32
    %c0_i32_1 = arith.constant 0 : i32
    return %c0_i32, %c0_i32_0 : i32, i32
  }
  func.func @transform_7(%arg0: i32) -> (i32, i32) {
    %c0_i32 = arith.constant 0 : i32
    %c0_i32_0 = arith.constant 0 : i32
    %c0_i32_1 = arith.constant 0 : i32
    return %c0_i32, %c0_i32_0 : i32, i32
  }
  func.func @transform_8(%arg0: i32) -> (i32, i32) {
    %c0_i32 = arith.constant 0 : i32
    %c0_i32_0 = arith.constant 0 : i32
    %c0_i32_1 = arith.constant 0 : i32
    return %c0_i32, %c0_i32_0 : i32, i32
  }
  func.func @transform_9(%arg0: i32) -> (i32, i32) {
    %c0_i32 = arith.constant 0 : i32
    %c0_i32_0 = arith.constant 0 : i32
    %c0_i32_1 = arith.constant 0 : i32
    return %c0_i32, %c0_i32_0 : i32, i32
  }
  func.func @transform_10(%arg0: i32) -> (i32, i32) {
    %c0_i32 = arith.constant 0 : i32
    %c0_i32_0 = arith.constant 0 : i32
    %c0_i32_1 = arith.constant 0 : i32
    return %c0_i32, %c0_i32_0 : i32, i32
  }
  func.func @transform_11(%arg0: i32) -> (i32, i32) {
    %c0_i32 = arith.constant 0 : i32
    %c0_i32_0 = arith.constant 0 : i32
    %c0_i32_1 = arith.constant 0 : i32
    return %c0_i32, %c0_i32_0 : i32, i32
  }
  func.func @transform_12(%arg0: i32) -> (i32, i32) {
    %c0_i32 = arith.constant 0 : i32
    %c0_i32_0 = arith.constant 0 : i32
    %c0_i32_1 = arith.constant 0 : i32
    return %c0_i32, %c0_i32_0 : i32, i32
  }
  func.func @transform_13(%arg0: i32) -> (i32, i32) {
    %c0_i32 = arith.constant 0 : i32
    %c0_i32_0 = arith.constant 0 : i32
    %c0_i32_1 = arith.constant 0 : i32
    return %c0_i32, %c0_i32_0 : i32, i32
  }
}

</mosaic_0001>

<bundles_post_ra>
// kernel: tile.13
= control target key start
LH: loop header
LB: loop body
LE: loop exit
PB: predicated region body
PF: predicated region fallthrough
CT: control target
= control target key end

     0   :  { %s40_s0 = inlined_call_operand.vmem [shape: f32[32], index: 0, kind: input, shape index: {}]   ;;  %s41_s1 = inlined_call_operand.vmem [shape: f32[25,32], index: 1, kind: output, shape index: {}]  }
   0x1   :  { %v4_v0 = vld [vmem:[%s40_s0] ss:$0 sm:$0xff] }
   0x2   :  { %5 = vst [vmem:[%s41_s1] sm:$0xff] %v4_v0  ;;  %12 = vst [vmem:[%s41_s1 + $0x8] sm:$0xff] %v4_v0 }
   0x3   :  { %13 = vst [vmem:[%s41_s1 + $0x10] sm:$0xff] %v4_v0  ;;  %14 = vst [vmem:[%s41_s1 + $0x18] sm:$0xff] %v4_v0 }

// kernel: tile.14
= control target key start
LH: loop header
LB: loop body
LE: loop exit
PB: predicated region body
PF: predicated region fallthrough
CT: control target
= control target key end

     0   :  { %s93_s8 = smov 96   ;;  %vm3_vm0 = vcmask 261120   ;;  %s95_s15 = smov 64   ;;  %vm10_vm1 = vcmask 1048320   ;;  %vm17_vm2 = vcmask 785920   ;;  %vm24_vm3 = vcmask 523520   ;;  %s139_s0 = inlined_call_operand.vmem [shape: f32[25,32], index: 0, kind: input, shape index: {}]   ;;  %s140_s1 = inlined_call_operand.vmem [shape: f32[1,800], index: 1, kind: output, shape index: {}]  }
   0x1   :  { %v81_v0 = vld [vmem:[%s139_s0 + $0x3] ss:$4 sm:$0x3f]   ;;  %v82_v1 = vld [vmem:[%s139_s0 + $0x2] ss:$4 sm:$0x3f]  }
   0x2   :  { %8 = vrot.lane.b32.xlu0 %v81_v0, %s93_s8  ;;  %v83_v2 = vld [vmem:[%s139_s0 + $0x1] ss:$4 sm:$0x3f]   ;;  %v2_v3 = vld [vmem:[%s139_s0] ss:$4 sm:$0x7f]  }
   0x3   :  { %s94_s0 = smov 32   ;;  %4 = vst.msk [vmem:[#allocation0] ss:$8 sm:$0xf] %vm3_vm0, %v2_v3  }
   0x4   :  { %22 = vrot.lane.b32.xlu1 %v83_v2, %s94_s0  ;;  %5 = vst.msk [vmem:[#allocation0] ss:$8 sm:$0x70] %vm3_vm0, %v2_v3  }
   0x6   :  { %15 = vrot.lane.b32.xlu0 %v82_v1, %s95_s15 }
   0xb   :  { %v70_v4 = vld [vmem:[#allocation0 + $0x30] sm:$0x1] }
   0xc   :  { %89 = vst [vmem:[%s140_s1 + $0x6] sm:$0x1] %v70_v4 }
  0x74   :  { %v9_v5 = vpop.permute.xlu0 %8  }
  0x75   :  { %11 = vst.msk [vmem:[#allocation0] ss:$8 sm:$0xf] %vm10_vm1, %v9_v5   ;;  %12 = vst.msk [vmem:[#allocation0] ss:$8 sm:$0x30] %vm10_vm1, %v9_v5  }
  0x76   :  { %v23_v6 = vpop.permute.xlu1 %22  }
  0x78   :  { %v16_v7 = vpop.permute.xlu0 %15  }
  0x79   :  { %18 = vst.msk [vmem:[#allocation0] ss:$8 sm:$0xf] %vm17_vm2, %v16_v7   ;;  %19 = vst.msk [vmem:[#allocation0] ss:$8 sm:$0x30] %vm17_vm2, %v16_v7  }
  0x7a   :  { %25 = vst.msk [vmem:[#allocation0] ss:$8 sm:$0xf] %vm24_vm3, %v23_v6   ;;  %26 = vst.msk [vmem:[#allocation0] ss:$8 sm:$0x30] %vm24_vm3, %v23_v6  }
  0x81   :  { %v31_v8 = vld [vmem:[#allocation0] sm:$0x1]  ;;  %v36_v9 = vld [vmem:[#allocation0 + $0x8] sm:$0x1]  ;;  %v42_v10 = vld [vmem:[#allocation0 + $0x10] sm:$0x1] }
  0x82   :  { %34 = vst [vmem:[%s140_s1] sm:$0x1] %v31_v8  ;;  %84 = vst [vmem:[%s140_s1 + $0x1] sm:$0x1] %v36_v9  ;;  %v49_v11 = vld [vmem:[#allocation0 + $0x18] sm:$0x1] }
  0x83   :  { %85 = vst [vmem:[%s140_s1 + $0x2] sm:$0x1] %v42_v10  ;;  %v56_v12 = vld [vmem:[#allocation0 + $0x20] sm:$0x1]  ;;  %v63_v13 = vld [vmem:[#allocation0 + $0x28] sm:$0x1] }
  0x84   :  { %86 = vst [vmem:[%s140_s1 + $0x3] sm:$0x1] %v49_v11  ;;  %87 = vst [vmem:[%s140_s1 + $0x4] sm:$0x1] %v56_v12 }
  0x85   :  { %88 = vst [vmem:[%s140_s1 + $0x5] sm:$0x1] %v63_v13 }

// kernel: encoder_cnn_medium.2
= control target key start
LH: loop header
LB: loop body
LE: loop exit
PB: predicated region body
PF: predicated region fallthrough
CT: control target
= control target key end

     0   :  { %vm12_vm0 = vcmask 261120   ;;  %v187_v0 = vmov 0.0   ;;  %vm97_vm1 = vcmask 253952   ;;  %s339_s1 = inlined_call_operand.vmem [shape: f32[8,32], index: 1, kind: output, shape index: {}]   ;;  %s340_s0 = inlined_call_operand.vmem [shape: f32[200,32], index: 0, kind: input, shape index: {}]  }
   0x1   :  { %13 = vst.msk [vmem:[%s339_s1] sm:$0xff] %vm12_vm0, %v187_v0  ;;  %v14_v1 = vld [vmem:[%s340_s0] sm:$0xff]  ;;  %v15_v2 = vld [vmem:[%s340_s0 + $0x8] sm:$0xff]  ;;  %v16_v3 = vld [vmem:[%s340_s0 + $0x10] sm:$0xff] }
   0x2   :  { %v41_v4 = vsel %vm12_vm0, %v14_v1, 0.0  ;;  %v42_v5 = vsel %vm12_vm0, %v15_v2, 0.0  ;;  %v44_v6 = vsel %vm12_vm0, %v16_v3, 0.0  ;;  %v17_v7 = vld [vmem:[%s340_s0 + $0x18] sm:$0xff]  ;;  %v18_v10 = vld [vmem:[%s340_s0 + $0x20] sm:$0xff]  ;;  %v19_v13 = vld [vmem:[%s340_s0 + $0x28] sm:$0xff]  ;;  %v100_v22 = vmul.f32 %v14_v1, %v14_v1 }
   0x3   :  { %v43_v8 = vadd.f32 %v42_v5, %v41_v4  ;;  %v46_v9 = vsel %vm12_vm0, %v17_v7, 0.0  ;;  %v48_v12 = vsel %vm12_vm0, %v18_v10, 0.0  ;;  %v50_v15 = vsel %vm12_vm0, %v19_v13, 0.0  ;;  %v20_v16 = vld [vmem:[%s340_s0 + $0x30] sm:$0xff]  ;;  %v21_v19 = vld [vmem:[%s340_s0 + $0x38] sm:$0xff]  ;;  %v22_v25 = vld [vmem:[%s340_s0 + $0x40] sm:$0xff] }
   0x4   :  { %v52_v18 = vsel %vm12_vm0, %v20_v16, 0.0  ;;  %v54_v21 = vsel %vm12_vm0, %v21_v19, 0.0  ;;  %v101_v23 = vmul.f32 %v15_v2, %v15_v2  ;;  %v102_v24 = vmul.f32 %v16_v3, %v16_v3  ;;  %v23_v27 = vld [vmem:[%s340_s0 + $0x48] sm:$0xff]  ;;  %v24_v36 = vld [vmem:[%s340_s0 + $0x50] sm:$0xff]  ;;  %v25_v42 = vld [vmem:[%s340_s0 + $0x58] sm:$0xff] }
   0x5   :  { %v45_v11 = vadd.f32 %v44_v6, %v43_v8  ;;  %v56_v28 = vsel %vm12_vm0, %v22_v25, 0.0  ;;  %v103_v29 = vmul.f32 %v17_v7, %v17_v7  ;;  %v58_v31 = vsel %vm12_vm0, %v23_v27, 0.0  ;;  %v26_v48 = vld [vmem:[%s340_s0 + $0x60] sm:$0xff]  ;;  %v27_v54 = vld [vmem:[%s340_s0 + $0x68] sm:$0xff]  ;;  %v28_v60 = vld [vmem:[%s340_s0 + $0x70] sm:$0xff] }
   0x6   :  { %v104_v32 = vmul.f32 %v18_v10, %v18_v10  ;;  %v125_v33 = vsel %vm12_vm0, %v100_v22, 0.0  ;;  %v126_v34 = vsel %vm12_vm0, %v101_v23, 0.0  ;;  %v128_v35 = vsel %vm12_vm0, %v102_v24, 0.0  ;;  %v29_v2 = vld [vmem:[%s340_s0 + $0x78] sm:$0xff]  ;;  %v30_v8 = vld [vmem:[%s340_s0 + $0x80] sm:$0xff] }
   0x7   :  { %v47_v14 = vadd.f32 %v46_v9, %v45_v11  ;;  %v127_v38 = vadd.f32 %v126_v34, %v125_v33  ;;  %v60_v39 = vsel %vm12_vm0, %v24_v36, 0.0  ;;  %v105_v40 = vmul.f32 %v19_v13, %v19_v13 }
   0x8   :  { %v130_v41 = vsel %vm12_vm0, %v103_v29, 0.0  ;;  %v62_v45 = vsel %vm12_vm0, %v25_v42, 0.0  ;;  %v106_v46 = vmul.f32 %v20_v16, %v20_v16  ;;  %v132_v47 = vsel %vm12_vm0, %v104_v32, 0.0  ;;  %v34_v32 = vld [vmem:[%s340_s0 + $0xa0] sm:$0xff] }
   0x9   :  { %v49_v17 = vadd.f32 %v48_v12, %v47_v14  ;;  %v129_v44 = vadd.f32 %v128_v35, %v127_v38  ;;  %v64_v51 = vsel %vm12_vm0, %v26_v48, 0.0  ;;  %v107_v52 = vmul.f32 %v21_v19, %v21_v19  ;;  %v31_v14 = vld [vmem:[%s340_s0 + $0x88] sm:$0xff] }
   0xa   :  { %v134_v53 = vsel %vm12_vm0, %v105_v40, 0.0  ;;  %v66_v57 = vsel %vm12_vm0, %v27_v54, 0.0  ;;  %v108_v58 = vmul.f32 %v22_v25, %v22_v25  ;;  %v136_v59 = vsel %vm12_vm0, %v106_v46, 0.0  ;;  %v35_v38 = vld [vmem:[%s340_s0 + $0xa8] sm:$0xff] }
   0xb   :  { %v51_v20 = vadd.f32 %v50_v15, %v49_v17  ;;  %v131_v50 = vadd.f32 %v130_v41, %v129_v44  ;;  %v68_v63 = vsel %vm12_vm0, %v28_v60, 0.0  ;;  %v109_v0 = vmul.f32 %v23_v27, %v23_v27  ;;  %v36_v44 = vld [vmem:[%s340_s0 + $0xb0] sm:$0xff] }
   0xc   :  { %v138_v1 = vsel %vm12_vm0, %v107_v52, 0.0  ;;  %v70_v5 = vsel %vm12_vm0, %v29_v2, 0.0  ;;  %v110_v6 = vmul.f32 %v24_v36, %v24_v36  ;;  %v140_v7 = vsel %vm12_vm0, %v108_v58, 0.0 }
   0xd   :  { %v53_v26 = vadd.f32 %v52_v18, %v51_v20  ;;  %v133_v56 = vadd.f32 %v132_v47, %v131_v50  ;;  %v72_v11 = vsel %vm12_vm0, %v30_v8, 0.0  ;;  %v111_v12 = vmul.f32 %v25_v42, %v25_v42  ;;  %v32_v20 = vld [vmem:[%s340_s0 + $0x90] sm:$0xff]  ;;  %v37_v50 = vld [vmem:[%s340_s0 + $0xb8] sm:$0xff] }
   0xe   :  { %v142_v13 = vsel %vm12_vm0, %v109_v0, 0.0  ;;  %v74_v17 = vsel %vm12_vm0, %v31_v14, 0.0  ;;  %v112_v18 = vmul.f32 %v26_v48, %v26_v48  ;;  %v144_v19 = vsel %vm12_vm0, %v110_v6, 0.0 }
   0xf   :  { %v55_v30 = vadd.f32 %v54_v21, %v53_v26  ;;  %v135_v62 = vadd.f32 %v134_v53, %v133_v56  ;;  %v76_v23 = vsel %vm12_vm0, %v32_v20, 0.0  ;;  %v113_v24 = vmul.f32 %v27_v54, %v27_v54  ;;  %v33_v26 = vld [vmem:[%s340_s0 + $0x98] sm:$0xff]  ;;  %v38_v56 = vld [vmem:[%s340_s0 + $0xc0] sm:$0xff] }
  0x10   :  { %v146_v25 = vsel %vm12_vm0, %v111_v12, 0.0  ;;  %v78_v29 = vsel %vm12_vm0, %v33_v26, 0.0  ;;  %v80_v35 = vsel %vm12_vm0, %v34_v32, 0.0  ;;  %v115_v36 = vmul.f32 %v29_v2, %v29_v2 }
  0x11   :  { %v57_v37 = vadd.f32 %v56_v28, %v55_v30  ;;  %v137_v4 = vadd.f32 %v136_v59, %v135_v62  ;;  %v114_v30 = vmul.f32 %v28_v60, %v28_v60  ;;  %v82_v41 = vsel %vm12_vm0, %v35_v38, 0.0 }
  0x12   :  { %v116_v42 = vmul.f32 %v30_v8, %v30_v8  ;;  %v84_v47 = vsel %vm12_vm0, %v36_v44, 0.0  ;;  %v117_v48 = vmul.f32 %v31_v14, %v31_v14  ;;  %v86_v53 = vsel %vm12_vm0, %v37_v50, 0.0 }
  0x13   :  { %v59_v43 = vadd.f32 %v58_v31, %v57_v37  ;;  %v139_v10 = vadd.f32 %v138_v1, %v137_v4  ;;  %v148_v31 = vsel %vm12_vm0, %v112_v18, 0.0  ;;  %v150_v37 = vsel %vm12_vm0, %v113_v24, 0.0 }
  0x14   :  { %v118_v54 = vmul.f32 %v32_v20, %v32_v20  ;;  %v88_v59 = vsel %vm12_vm0, %v38_v56, 0.0  ;;  %v119_v60 = vmul.f32 %v33_v26, %v33_v26  ;;  %v120_v0 = vmul.f32 %v34_v32, %v34_v32 }
  0x15   :  { %v61_v49 = vadd.f32 %v60_v39, %v59_v43  ;;  %v141_v16 = vadd.f32 %v140_v7, %v139_v10  ;;  %v152_v43 = vsel %vm12_vm0, %v114_v30, 0.0  ;;  %v121_v4 = vmul.f32 %v35_v38, %v35_v38 }
  0x16   :  { %v160_v1 = vsel %vm12_vm0, %v118_v54, 0.0  ;;  %v122_v8 = vmul.f32 %v36_v44, %v36_v44  ;;  %v123_v12 = vmul.f32 %v37_v50, %v37_v50 }
  0x17   :  { %v63_v55 = vadd.f32 %v62_v45, %v61_v49  ;;  %v143_v22 = vadd.f32 %v142_v13, %v141_v16  ;;  %v154_v49 = vsel %vm12_vm0, %v115_v36, 0.0  ;;  %v166_v13 = vsel %vm12_vm0, %v121_v4, 0.0 }
  0x18   :  { %v124_v16 = vmul.f32 %v38_v56, %v38_v56  ;;  %v170_v20 = vsel %vm12_vm0, %v123_v12, 0.0 }
  0x19   :  { %v65_v61 = vadd.f32 %v64_v51, %v63_v55  ;;  %v145_v28 = vadd.f32 %v144_v19, %v143_v22  ;;  %v156_v55 = vsel %vm12_vm0, %v116_v42, 0.0 }
  0x1a   :  { %v172_v24 = vsel %vm12_vm0, %v124_v16, 0.0 }
  0x1b   :  { %v67_v3 = vadd.f32 %v66_v57, %v65_v61  ;;  %v147_v34 = vadd.f32 %v146_v25, %v145_v28  ;;  %v158_v61 = vsel %vm12_vm0, %v117_v48, 0.0 }
  0x1d   :  { %v69_v9 = vadd.f32 %v68_v63, %v67_v3  ;;  %v149_v40 = vadd.f32 %v148_v31, %v147_v34  ;;  %v99_v34 = vld [vmem:[%s339_s1 + $0x1] sm:$0x1] }
  0x1f   :  { %v71_v15 = vadd.f32 %v70_v5, %v69_v9  ;;  %v151_v46 = vadd.f32 %v150_v37, %v149_v40  ;;  %v162_v5 = vsel %vm12_vm0, %v119_v60, 0.0  ;;  %v164_v9 = vsel %vm12_vm0, %v120_v0, 0.0 }
  0x21   :  { %v73_v21 = vadd.f32 %v72_v11, %v71_v15  ;;  %v153_v52 = vadd.f32 %v152_v43, %v151_v46 }
  0x23   :  { %v75_v27 = vadd.f32 %v74_v17, %v73_v21  ;;  %v155_v58 = vadd.f32 %v154_v49, %v153_v52  ;;  %v168_v17 = vsel %vm12_vm0, %v122_v8, 0.0 }
  0x25   :  { %v77_v33 = vadd.f32 %v76_v23, %v75_v27  ;;  %v157_v63 = vadd.f32 %v156_v55, %v155_v58  ;;  %v39_v23 = vld [vmem:[%s339_s1] sm:$0x1] }
  0x27   :  { %v79_v39 = vadd.f32 %v78_v29, %v77_v33  ;;  %v159_v3 = vadd.f32 %v158_v61, %v157_v63 }
  0x29   :  { %v81_v45 = vadd.f32 %v80_v35, %v79_v39  ;;  %v161_v7 = vadd.f32 %v160_v1, %v159_v3 }
  0x2b   :  { %v83_v51 = vadd.f32 %v82_v41, %v81_v45  ;;  %v163_v11 = vadd.f32 %v162_v5, %v161_v7 }
  0x2d   :  { %v85_v57 = vadd.f32 %v84_v47, %v83_v51  ;;  %v165_v15 = vadd.f32 %v164_v9, %v163_v11 }
  0x2f   :  { %v87_v62 = vadd.f32 %v86_v53, %v85_v57  ;;  %v167_v19 = vadd.f32 %v166_v13, %v165_v15 }
  0x31   :  { %v89_v2 = vadd.f32 %v88_v59, %v87_v62  ;;  %v169_v22 = vadd.f32 %v168_v17, %v167_v19 }
  0x33   :  { %v90_v6 = vrot.slane %v89_v2, 4  ;;  %v171_v26 = vadd.f32 %v170_v20, %v169_v22 }
  0x35   :  { %v91_v10 = vadd.f32 %v90_v6, %v89_v2  ;;  %v173_v28 = vadd.f32 %v172_v24, %v171_v26 }
  0x37   :  { %v92_v14 = vrot.slane %v91_v10, 2  ;;  %v174_v29 = vrot.slane %v173_v28, 4 }
  0x39   :  { %v93_v18 = vadd.f32 %v92_v14, %v91_v10  ;;  %v175_v30 = vadd.f32 %v174_v29, %v173_v28 }
  0x3b   :  { %v94_v21 = vrot.slane %v93_v18, 1  ;;  %v176_v31 = vrot.slane %v175_v30, 2 }
  0x3d   :  { %v95_v25 = vadd.f32 %v94_v21, %v93_v18  ;;  %v177_v32 = vadd.f32 %v176_v31, %v175_v30 }
  0x3f   :  { %v96_v27 = vadd.f32 %v95_v25, %v39_v23  ;;  %v178_v33 = vrot.slane %v177_v32, 1 }
  0x41   :  { %98 = vst.msk [vmem:[%s339_s1] sm:$0x1] %vm97_vm1, %v96_v27  ;;  %v179_v35 = vadd.f32 %v178_v33, %v177_v32 }
  0x43   :  { %v180_v36 = vadd.f32 %v179_v35, %v99_v34 }
  0x45   :  { %181 = vst.msk [vmem:[%s339_s1 + $0x1] sm:$0x1] %vm97_vm1, %v180_v36 }

// kernel: encoder_cnn_medium.3
= control target key start
LH: loop header
LB: loop body
LE: loop exit
PB: predicated region body
PF: predicated region fallthrough
CT: control target
= control target key end

     0   :  { %v53_v23 = vlaneseq  ;;  %vm253_vm0 = vcmask 261120   ;;  %vm1145_vm1 = vmmov 0   ;;  %vm545_vm2 = vcmask 39936   ;;  %s1631_s3 = inlined_call_operand.vmem [shape: f32[800,5], index: 3, kind: input, shape index: {}]   ;;  %s1632_s0 = inlined_call_operand.vmem [shape: f32[8,800], index: 0, kind: input, shape index: {}]   ;;  %s1633_s1 = inlined_call_operand.vmem [shape: f32[1,800], index: 1, kind: input, shape index: {}]   ;;  %s1634_s2 = inlined_call_operand.vmem [shape: f32[1,800], index: 2, kind: input, shape index: {}]   ;;  %s1635_s4 = inlined_call_operand.vmem [shape: f32[1,5], index: 4, kind: input, shape index: {}]   ;;  %s1636_s5 = inlined_call_operand.vmem [shape: f32[4,32], index: 5, kind: input, shape index: {}]   ;;  %s1637_s7 = inlined_call_operand.vmem [shape: f32[32,32], index: 7, kind: input, shape index: {}]   ;;  %s1638_s6 = inlined_call_operand.vmem [shape: f32[1,32], index: 6, kind: input, shape index: {}]   ;;  %s1639_s8 = inlined_call_operand.vmem [shape: f32[1,32], index: 8, kind: input, shape index: {}]   ;;  %s1640_s11 = inlined_call_operand.vmem [shape: f32[32,4], index: 11, kind: input, shape index: {}]   ;;  %s1641_s9 = inlined_call_operand.vmem [shape: f32[1,32], index: 9, kind: input, shape index: {}]   ;;  %s1642_s10 = inlined_call_operand.vmem [shape: f32[1,32], index: 10, kind: input, shape index: {}]   ;;  %s1643_s12 = inlined_call_operand.vmem [shape: f32[1,4], index: 12, kind: input, shape index: {}]   ;;  %s1644_s13 = inlined_call_operand.vmem [shape: f32[10,4], index: 13, kind: output, shape index: {}]  }
   0x1   :  { %v177_v0 = vld [vmem:[%s1631_s3 + $0xf8] sm:$0xff]  ;;  %v176_v2 = vld [vmem:[%s1631_s3 + $0xf0] sm:$0xff]  ;;  %v175_v6 = vld [vmem:[%s1631_s3 + $0xe8] sm:$0xff]  ;;  %vm636_vm3 = vcmask 1043456   ;;  %vm620_vm4 = vcmask 1044480   ;;  %vm630_vm5 = vcmask 31744  }
   0x2   :  { %v161_v1 = vld [vmem:[%s1631_s3 + $0x78] sm:$0xff]  ;;  %971 = vmatprep.subr.mxu0 %v177_v0  ;;  %v160_v4 = vld [vmem:[%s1631_s3 + $0x70] sm:$0xff]  ;;  %v159_v8 = vld [vmem:[%s1631_s3 + $0x68] sm:$0xff]  ;;  %v1309_v32 = vshrl.u32 %v53_v23, 7  ;;  %vm812_vm6 = vcmask 254976   ;;  %vm950_vm7 = vcmask 25600  }
   0x3   :  { %v209_v3 = vld [vmem:[%s1631_s3 + $0x1f8] sm:$0xff]  ;;  %972 = vmatpush3.msra.mxu0 %v161_v1  ;;  %v208_v7 = vld [vmem:[%s1631_s3 + $0x1f0] sm:$0xff]  ;;  %v207_v10 = vld [vmem:[%s1631_s3 + $0x1e8] sm:$0xff] }
   0x4   :  { %v193_v5 = vld [vmem:[%s1631_s3 + $0x178] sm:$0xff]  ;;  %1006 = vmatprep.subr.mxu1 %v209_v3  ;;  %973 = vmatprep.subr.mxu0 %v176_v2  ;;  %v192_v9 = vld [vmem:[%s1631_s3 + $0x170] sm:$0xff]  ;;  %v174_v11 = vld [vmem:[%s1631_s3 + $0xe0] sm:$0xff]  ;;  %v59_v41 = vsub.s32 1, %v1309_v32  ;;  %v55_v42 = vsub.s32 0, %v1309_v32  ;;  %v67_v43 = vsub.s32 3, %v1309_v32 }
   0x5   :  { %1007 = vmatpush3.msra.mxu1 %v193_v5  ;;  %974 = vmatpush3.msra.mxu0 %v160_v4  ;;  %v191_v12 = vld [vmem:[%s1631_s3 + $0x168] sm:$0xff]  ;;  %v158_v13 = vld [vmem:[%s1631_s3 + $0x60] sm:$0xff]  ;;  %v173_v15 = vld [vmem:[%s1631_s3 + $0xd8] sm:$0xff]  ;;  %v63_v50 = vsub.s32 2, %v1309_v32  ;;  %v75_v23 = vsub.s32 5, %v1309_v32 }
   0x6   :  { %1008 = vmatprep.subr.mxu1 %v208_v7  ;;  %975 = vmatprep.subr.mxu0 %v175_v6  ;;  %v206_v14 = vld [vmem:[%s1631_s3 + $0x1e0] sm:$0xff]  ;;  %v157_v17 = vld [vmem:[%s1631_s3 + $0x58] sm:$0xff]  ;;  %v172_v19 = vld [vmem:[%s1631_s3 + $0xd0] sm:$0xff] }
   0x7   :  { %1009 = vmatpush3.msra.mxu1 %v192_v9  ;;  %976 = vmatpush3.msra.mxu0 %v159_v8  ;;  %v190_v16 = vld [vmem:[%s1631_s3 + $0x160] sm:$0xff]  ;;  %v205_v18 = vld [vmem:[%s1631_s3 + $0x1d8] sm:$0xff]  ;;  %v156_v21 = vld [vmem:[%s1631_s3 + $0x50] sm:$0xff] }
   0x8   :  { %1010 = vmatprep.subr.mxu1 %v207_v10  ;;  %977 = vmatprep.subr.mxu0 %v174_v11  ;;  %v189_v20 = vld [vmem:[%s1631_s3 + $0x158] sm:$0xff]  ;;  %v204_v22 = vld [vmem:[%s1631_s3 + $0x1d0] sm:$0xff]  ;;  %v171_v24 = vld [vmem:[%s1631_s3 + $0xc8] sm:$0xff] }
   0x9   :  { %1011 = vmatpush3.msra.mxu1 %v191_v12  ;;  %978 = vmatpush3.msra.mxu0 %v158_v13  ;;  %v188_v25 = vld [vmem:[%s1631_s3 + $0x150] sm:$0xff]  ;;  %v155_v26 = vld [vmem:[%s1631_s3 + $0x48] sm:$0xff]  ;;  %v170_v28 = vld [vmem:[%s1631_s3 + $0xc0] sm:$0xff] }
   0xa   :  { %1012 = vmatprep.subr.mxu1 %v206_v14  ;;  %979 = vmatprep.subr.mxu0 %v173_v15  ;;  %v203_v27 = vld [vmem:[%s1631_s3 + $0x1c8] sm:$0xff]  ;;  %v154_v30 = vld [vmem:[%s1631_s3 + $0x40] sm:$0xff]  ;;  %v169_v33 = vld [vmem:[%s1631_s3 + $0xb8] sm:$0xff] }
   0xb   :  { %1013 = vmatpush3.msra.mxu1 %v190_v16  ;;  %980 = vmatpush3.msra.mxu0 %v157_v17  ;;  %v187_v29 = vld [vmem:[%s1631_s3 + $0x148] sm:$0xff]  ;;  %v202_v31 = vld [vmem:[%s1631_s3 + $0x1c0] sm:$0xff]  ;;  %v153_v35 = vld [vmem:[%s1631_s3 + $0x38] sm:$0xff] }
   0xc   :  { %1014 = vmatprep.subr.mxu1 %v205_v18  ;;  %981 = vmatprep.subr.mxu0 %v172_v19  ;;  %v186_v34 = vld [vmem:[%s1631_s3 + $0x140] sm:$0xff]  ;;  %v201_v36 = vld [vmem:[%s1631_s3 + $0x1b8] sm:$0xff]  ;;  %v168_v37 = vld [vmem:[%s1631_s3 + $0xb0] sm:$0xff] }
   0xd   :  { %1015 = vmatpush3.msra.mxu1 %v189_v20  ;;  %982 = vmatpush3.msra.mxu0 %v156_v21  ;;  %v185_v38 = vld [vmem:[%s1631_s3 + $0x138] sm:$0xff]  ;;  %v152_v39 = vld [vmem:[%s1631_s3 + $0x30] sm:$0xff]  ;;  %v167_v44 = vld [vmem:[%s1631_s3 + $0xa8] sm:$0xff] }
   0xe   :  { %1016 = vmatprep.subr.mxu1 %v204_v22  ;;  %983 = vmatprep.subr.mxu0 %v171_v24  ;;  %v200_v40 = vld [vmem:[%s1631_s3 + $0x1b0] sm:$0xff]  ;;  %v151_v45 = vld [vmem:[%s1631_s3 + $0x28] sm:$0xff]  ;;  %v166_v47 = vld [vmem:[%s1631_s3 + $0xa0] sm:$0xff] }
   0xf   :  { %1017 = vmatpush3.msra.mxu1 %v188_v25  ;;  %984 = vmatpush3.msra.mxu0 %v155_v26  ;;  %v184_v46 = vld [vmem:[%s1631_s3 + $0x130] sm:$0xff]  ;;  %v199_v48 = vld [vmem:[%s1631_s3 + $0x1a8] sm:$0xff]  ;;  %v150_v49 = vld [vmem:[%s1631_s3 + $0x20] sm:$0xff] }
  0x10   :  { %1018 = vmatprep.subr.mxu1 %v203_v27  ;;  %985 = vmatprep.subr.mxu0 %v170_v28  ;;  %v183_v51 = vld [vmem:[%s1631_s3 + $0x128] sm:$0xff]  ;;  %v1366_v53 = vld [vmem:[%s1633_s1] sm:$0x7f]  ;;  %v165_v60 = vld [vmem:[%s1631_s3 + $0x98] sm:$0xff] }
  0x11   :  { %1019 = vmatpush3.msra.mxu1 %v187_v29  ;;  %986 = vmatpush3.msra.mxu0 %v154_v30  ;;  %v45_v52 = vld [vmem:[%s1632_s0 + $0x8] sm:$0xff]  ;;  %v198_v54 = vld [vmem:[%s1631_s3 + $0x1a0] sm:$0xff]  ;;  %v60_v55 = vrot.slane %v1366_v53, %v59_v41  ;;  %v56_v58 = vrot.slane %v1366_v53, %v55_v42  ;;  %v68_v59 = vrot.slane %v1366_v53, %v67_v43  ;;  %v149_v61 = vld [vmem:[%s1631_s3 + $0x18] sm:$0xff]  ;;  %v79_v29 = vsub.s32 6, %v1309_v32 }
  0x12   :  { %1020 = vmatprep.subr.mxu1 %v202_v31  ;;  %987 = vmatprep.subr.mxu0 %v169_v33  ;;  %v1375_v56 = vld [vmem:[%s1634_s2] sm:$0x7f]  ;;  %v197_v2 = vld [vmem:[%s1631_s3 + $0x198] sm:$0xff]  ;;  %v46_v6 = vld [vmem:[%s1632_s0 + $0x10] sm:$0xff]  ;;  %v64_v7 = vrot.slane %v1366_v53, %v63_v50 }
  0x13   :  { %1021 = vmatpush3.msra.mxu1 %v186_v34  ;;  %988 = vmatpush3.msra.mxu0 %v153_v35  ;;  %v44_v57 = vld [vmem:[%s1632_s0] sm:$0xff]  ;;  %v104_v63 = vrot.slane %v1375_v56, %v59_v41  ;;  %v100_v0 = vrot.slane %v1375_v56, %v55_v42  ;;  %v112_v1 = vrot.slane %v1375_v56, %v67_v43  ;;  %v47_v5 = vld [vmem:[%s1632_s0 + $0x18] sm:$0xff]  ;;  %v164_v8 = vld [vmem:[%s1631_s3 + $0x90] sm:$0xff] }
  0x14   :  { %1022 = vmatprep.subr.mxu1 %v201_v36  ;;  %989 = vmatprep.subr.mxu0 %v168_v37  ;;  %v182_v62 = vld [vmem:[%s1631_s3 + $0x120] sm:$0xff]  ;;  %v89_v3 = vmul.f32 %v60_v55, %v45_v52  ;;  %v88_v4 = vmul.f32 %v56_v58, %v44_v57  ;;  %v181_v9 = vld [vmem:[%s1631_s3 + $0x118] sm:$0xff]  ;;  %v91_v10 = vmul.f32 %v68_v59, %v47_v5  ;;  %v148_v12 = vld [vmem:[%s1631_s3 + $0x10] sm:$0xff] }
  0x15   :  { %1023 = vmatpush3.msra.mxu1 %v185_v38  ;;  %990 = vmatpush3.msra.mxu0 %v152_v39  ;;  %v108_v11 = vrot.slane %v1375_v56, %v63_v50  ;;  %v196_v13 = vld [vmem:[%s1631_s3 + $0x190] sm:$0xff]  ;;  %v90_v16 = vmul.f32 %v64_v7, %v46_v6  ;;  %v163_v17 = vld [vmem:[%s1631_s3 + $0x88] sm:$0xff]  ;;  %v162_v24 = vld [vmem:[%s1631_s3 + $0x80] sm:$0xff]  ;;  %v76_v35 = vrot.slane %v1366_v53, %v75_v23  ;;  %v1144_v50 = vmov 0.0  }
  0x16   :  { %1024 = vmatprep.subr.mxu1 %v200_v40  ;;  %991 = vmatprep.subr.mxu0 %v167_v44  ;;  %v133_v14 = vadd.f32 %v104_v63, %v89_v3  ;;  %v132_v15 = vadd.f32 %v100_v0, %v88_v4  ;;  %v180_v18 = vld [vmem:[%s1631_s3 + $0x110] sm:$0xff]  ;;  %v147_v19 = vld [vmem:[%s1631_s3 + $0x8] sm:$0xff]  ;;  %v135_v22 = vadd.f32 %v112_v1, %v91_v10  ;;  %v146_v26 = vld [vmem:[%s1631_s3] sm:$0xff]  ;;  %v71_v6 = vsub.s32 4, %v1309_v32 }
  0x17   :  { %1025 = vmatpush3.msra.mxu1 %v184_v46  ;;  %992 = vmatpush3.msra.mxu0 %v151_v45  ;;  %v195_v20 = vld [vmem:[%s1631_s3 + $0x188] sm:$0xff]  ;;  %v134_v25 = vadd.f32 %v108_v11, %v90_v16  ;;  %v194_v30 = vld [vmem:[%s1631_s3 + $0x180] sm:$0xff]  ;;  %v241_v31 = vld [vmem:[%s1631_s3 + $0x2f8] sm:$0xff]  ;;  %v120_v39 = vrot.slane %v1375_v56, %v75_v23  ;;  %v80_v40 = vrot.slane %v1366_v53, %v79_v29 }
  0x18   :  { %1026 = vmatprep.subr.mxu1 %v199_v48  ;;  %993 = vmatprep.subr.mxu0 %v166_v47  ;;  %v140_v21 = vmax.f32 %v133_v14, 0.0  ;;  %v179_v27 = vld [vmem:[%s1631_s3 + $0x108] sm:$0xff]  ;;  %v139_v28 = vmax.f32 %v132_v15, 0.0  ;;  %v178_v33 = vld [vmem:[%s1631_s3 + $0x100] sm:$0xff]  ;;  %v142_v34 = vmax.f32 %v135_v22, 0.0  ;;  %v225_v36 = vld [vmem:[%s1631_s3 + $0x278] sm:$0xff]  ;;  %v124_v46 = vrot.slane %v1375_v56, %v79_v29 }
  0x19   :  { %1027 = vmatpush3.msra.mxu1 %v183_v51  ;;  %994 = vmatpush3.msra.mxu0 %v150_v49  ;;  %v141_v37 = vmax.f32 %v134_v25, 0.0  ;;  %v240_v38 = vld [vmem:[%s1631_s3 + $0x2f0] sm:$0xff]  ;;  %v49_v42 = vld [vmem:[%s1632_s0 + $0x28] sm:$0xff]  ;;  %v245_v44 = vld [vmem:[%s1631_s3 + $0x318] sm:$0xff]  ;;  %v72_v10 = vrot.slane %v1366_v53, %v71_v6  ;;  %v116_v16 = vrot.slane %v1375_v56, %v71_v6 }
  0x1a   :  { %1028 = vmatprep.subr.mxu1 %v198_v54  ;;  %995 = vmatprep.subr.mxu0 %v165_v60  ;;  %v224_v41 = vld [vmem:[%s1631_s3 + $0x270] sm:$0xff]  ;;  %v239_v43 = vld [vmem:[%s1631_s3 + $0x2e8] sm:$0xff]  ;;  %v93_v45 = vmul.f32 %v76_v35, %v49_v42  ;;  %v238_v49 = vld [vmem:[%s1631_s3 + $0x2e0] sm:$0xff] }
  0x1b   :  { %1029 = vmatpush3.msra.mxu1 %v182_v62  ;;  %996 = vmatpush3.msra.mxu0 %v149_v61  ;;  %v223_v47 = vld [vmem:[%s1631_s3 + $0x268] sm:$0xff]  ;;  %v50_v48 = vld [vmem:[%s1632_s0 + $0x30] sm:$0xff]  ;;  %v222_v55 = vld [vmem:[%s1631_s3 + $0x260] sm:$0xff] }
  0x1c   :  { %1030 = vmatprep.subr.mxu1 %v197_v2  ;;  %997 = vmatprep.subr.mxu0 %v164_v8  ;;  %v137_v51 = vadd.f32 %v120_v39, %v93_v45  ;;  %v244_v52 = vld [vmem:[%s1631_s3 + $0x310] sm:$0xff]  ;;  %v94_v54 = vmul.f32 %v80_v40, %v50_v48  ;;  %v237_v57 = vld [vmem:[%s1631_s3 + $0x2d8] sm:$0xff]  ;;  %v243_v61 = vld [vmem:[%s1631_s3 + $0x308] sm:$0xff] }
  0x1d   :  { %1031 = vmatpush3.msra.mxu1 %v181_v9  ;;  %998 = vmatpush3.msra.mxu0 %v148_v12  ;;  %v221_v60 = vld [vmem:[%s1631_s3 + $0x258] sm:$0xff]  ;;  %v236_v62 = vld [vmem:[%s1631_s3 + $0x2d0] sm:$0xff]  ;;  %v242_v0 = vld [vmem:[%s1631_s3 + $0x300] sm:$0xff] }
  0x1e   :  { %1032 = vmatprep.subr.mxu1 %v196_v13  ;;  %999 = vmatprep.subr.mxu0 %v163_v17  ;;  %v144_v58 = vmax.f32 %v137_v51, 0.0  ;;  %v138_v59 = vadd.f32 %v124_v46, %v94_v54  ;;  %v220_v63 = vld [vmem:[%s1631_s3 + $0x250] sm:$0xff]  ;;  %v235_v1 = vld [vmem:[%s1631_s3 + $0x2c8] sm:$0xff]  ;;  %v234_v4 = vld [vmem:[%s1631_s3 + $0x2c0] sm:$0xff] }
  0x1f   :  { %1033 = vmatpush3.msra.mxu1 %v180_v18  ;;  %1000 = vmatpush3.msra.mxu0 %v147_v19  ;;  %v219_v3 = vld [vmem:[%s1631_s3 + $0x248] sm:$0xff]  ;;  %v218_v5 = vld [vmem:[%s1631_s3 + $0x240] sm:$0xff]  ;;  %v233_v7 = vld [vmem:[%s1631_s3 + $0x2b8] sm:$0xff] }
  0x20   :  { %1034 = vmatprep.subr.mxu1 %v195_v20  ;;  %1001 = vmatprep.subr.mxu0 %v162_v24  ;;  %v145_v2 = vmax.f32 %v138_v59, 0.0  ;;  %v217_v8 = vld [vmem:[%s1631_s3 + $0x238] sm:$0xff]  ;;  %v232_v9 = vld [vmem:[%s1631_s3 + $0x2b0] sm:$0xff]  ;;  %v231_v11 = vld [vmem:[%s1631_s3 + $0x2a8] sm:$0xff] }
  0x21   :  { %321 = vmatprep.mubr.f32.mxu0 %v140_v21  ;;  %1002 = vmatpush3.msra.mxu0 %v146_v26  ;;  %v216_v32 = vld [vmem:[%s1631_s3 + $0x230] sm:$0xff]  ;;  %v48_v12 = vld [vmem:[%s1632_s0 + $0x20] sm:$0xff]  ;;  %v215_v13 = vld [vmem:[%s1631_s3 + $0x228] sm:$0xff] }
  0x22   :  { %1035 = vmatpush3.msra.mxu1 %v179_v27  ;;  %322 = vmatmul.mubr.f32.vlgmr.msra.gmra.mxu0 %v139_v28  ;;  %v230_v14 = vld [vmem:[%s1631_s3 + $0x2a0] sm:$0xff]  ;;  %v92_v15 = vmul.f32 %v72_v10, %v48_v12  ;;  %v229_v17 = vld [vmem:[%s1631_s3 + $0x298] sm:$0xff]  ;;  %v228_v19 = vld [vmem:[%s1631_s3 + $0x290] sm:$0xff] }
  0x23   :  { %1036 = vmatprep.subr.mxu1 %v194_v30  ;;  %1041 = vmatprep.subr.mxu0 %v241_v31  ;;  %v214_v53 = vld [vmem:[%s1631_s3 + $0x220] sm:$0xff]  ;;  %v213_v18 = vld [vmem:[%s1631_s3 + $0x218] sm:$0xff]  ;;  %v212_v56 = vld [vmem:[%s1631_s3 + $0x210] sm:$0xff] }
  0x24   :  { %1037 = vmatpush3.msra.mxu1 %v178_v33  ;;  %391 = vmatprep.mubr.f32.mxu1 %v142_v34  ;;  %v136_v20 = vadd.f32 %v116_v16, %v92_v15  ;;  %v227_v21 = vld [vmem:[%s1631_s3 + $0x288] sm:$0xff]  ;;  %v226_v23 = vld [vmem:[%s1631_s3 + $0x280] sm:$0xff] }
  0x25   :  { %1042 = vmatpush3.msra.mxu0 %v225_v36  ;;  %392 = vmatmul.mubr.f32.vlgmr.msra.gmra.mxu1 %v141_v37  ;;  %v211_v22 = vld [vmem:[%s1631_s3 + $0x208] sm:$0xff]  ;;  %v210_v24 = vld [vmem:[%s1631_s3 + $0x200] sm:$0xff] }
  0x26   :  { %1043 = vmatprep.subr.mxu0 %v240_v38  ;;  %1096 = vmatprep.subr.mxu1 %v1144_v50  ;;  %v143_v25 = vmax.f32 %v136_v20, 0.0  ;;  %v956_v34 = vld [vmem:[%s1635_s4] ss:$0 sm:$0xff] }
  0x27   :  { %1044 = vmatpush3.msra.mxu0 %v224_v41  ;;  %1097 = vmatpush3.msra.mxu1 %v245_v44  ;;  %v717_v59 = vld [vmem:[%s1637_s7] sm:$0xff] }
  0x28   :  { %1045 = vmatprep.subr.mxu0 %v239_v43  ;;  %1098 = vmatprep.subr.mxu1 %v1144_v50  ;;  %v857_v20 = vld [vmem:[%s1640_s11] sm:$0xff] }
  0x29   :  { %1046 = vmatpush3.msra.mxu0 %v223_v47  ;;  %1099 = vmatpush3.msra.mxu1 %v244_v52  ;;  %v622_v47 = vld [vmem:[%s1636_s5] sm:$0xf] }
  0x2a   :  { %1047 = vmatprep.subr.mxu0 %v238_v49  ;;  %461 = vmatprep.mubr.f32.mxu0 %v144_v58  ;;  %v718_v58 = vld [vmem:[%s1637_s7 + $0x8] sm:$0xff] }
  0x2b   :  { %1048 = vmatpush3.msra.mxu0 %v222_v55  ;;  %1100 = vmatprep.subr.mxu1 %v1144_v50  ;;  %v720_v55 = vld [vmem:[%s1637_s7 + $0x18] sm:$0xff] }
  0x2c   :  { %1049 = vmatprep.subr.mxu0 %v237_v57  ;;  %1101 = vmatpush3.msra.mxu1 %v243_v61  ;;  %v719_v57 = vld [vmem:[%s1637_s7 + $0x10] sm:$0xff] }
  0x2d   :  { %1050 = vmatpush3.msra.mxu0 %v221_v60  ;;  %1102 = vmatprep.subr.mxu1 %v1144_v50  ;;  %v959_v60 = vld [vmem:[%s1638_s6] ss:$0 sm:$0xff] }
  0x2e   :  { %1051 = vmatprep.subr.mxu0 %v236_v62  ;;  %1103 = vmatpush3.msra.mxu1 %v242_v0 }
  0x2f   :  { %1052 = vmatpush3.msra.mxu0 %v220_v63  ;;  %1104 = vmatprep.mubr.msk.f32.mxu1 %vm1145_vm1, %v1144_v50 }
  0x30   :  { %1053 = vmatprep.subr.mxu0 %v235_v1  ;;  %1105 = vmatmul.mubr.msk.f32.vlgmr.msra.gmra.mxu1 %vm253_vm0, %v145_v2 }
  0x31   :  { %1054 = vmatpush3.msra.mxu0 %v219_v3  ;;  %1107 = vmatprep.subr.msk.mxu1 %vm636_vm3, %v622_v47 }
  0x32   :  { %1055 = vmatprep.subr.mxu0 %v234_v4  ;;  %1108 = vmatpush3.msk.msra.mxu1 %vm636_vm3, %v622_v47  ;;  %v963_v4 = vld [vmem:[%s1639_s8] ss:$0 sm:$0xff] }
  0x33   :  { %1056 = vmatpush3.msra.mxu0 %v218_v5  ;;  %1112 = vmatprep.subr.mxu1 %v720_v55 }
  0x34   :  { %1057 = vmatprep.subr.mxu0 %v233_v7 }
  0x35   :  { %1058 = vmatpush3.msra.mxu0 %v217_v8 }
  0x36   :  { %1059 = vmatprep.subr.mxu0 %v232_v9 }
  0x37   :  { %1060 = vmatpush3.msra.mxu0 %v216_v32 }
  0x38   :  { %1061 = vmatprep.subr.mxu0 %v231_v11 }
  0x39   :  { %1062 = vmatpush3.msra.mxu0 %v215_v13 }
  0x3a   :  { %1063 = vmatprep.subr.mxu0 %v230_v14 }
  0x3b   :  { %1064 = vmatpush3.msra.mxu0 %v214_v53 }
  0x3c   :  { %1065 = vmatprep.subr.mxu0 %v229_v17 }
  0x3d   :  { %1066 = vmatpush3.msra.mxu0 %v213_v18  ;;  %v860_v18 = vld [vmem:[%s1640_s11 + $0x18] sm:$0xff] }
  0x3e   :  { %1067 = vmatprep.subr.mxu0 %v228_v19  ;;  %v859_v19 = vld [vmem:[%s1640_s11 + $0x10] sm:$0xff] }
  0x3f   :  { %1068 = vmatpush3.msra.mxu0 %v212_v56  ;;  %v858_v56 = vld [vmem:[%s1640_s11 + $0x8] sm:$0xff] }
  0x40   :  { %1069 = vmatprep.subr.mxu0 %v227_v21 }
  0x41   :  { %1070 = vmatpush3.msra.mxu0 %v211_v22 }
  0x42   :  { %1071 = vmatprep.subr.mxu0 %v226_v23 }
  0x43   :  { %1072 = vmatpush3.msra.mxu0 %v210_v24 }
  0x44   :  { %462 = vmatmul.mubr.f32.vlgmr.msra.gmra.mxu0 %v143_v25 }
  0xe2   :  { %v1003_v30 = vpop.f32.mrf.mxu0 }
  0xe4   :  { %v1004_v31 = vpop.f32.mrf.mxu0 }
  0xe5   :  { %v1038_v26 = vpop.f32.mrf.mxu1  ;;  %v1005_v33 = vadd.f32 %v1004_v31, %v1003_v30  ;;  %v967_v30 = vld [vmem:[%s1642_s10] ss:$0 sm:$0xff] }
  0xe7   :  { %v1039_v27 = vpop.f32.mrf.mxu1  ;;  %v324_v35 = vadd.f32 %v1005_v33, %v956_v34 }
  0xe8   :  { %v1040_v36 = vadd.f32 %v1039_v27, %v1038_v26 }
  0xea   :  { %v394_v39 = vadd.f32 %v1040_v36, %v324_v35 }
  0xf0   :  { %v533_v28 = vpop.f32.mrf.mxu1 }
  0xf2   :  { %v1106_v29 = vpop.f32.mrf.mxu1 }
 0x104   :  { %v1073_v37 = vpop.f32.mrf.mxu0 }
 0x106   :  { %v1074_v38 = vpop.f32.mrf.mxu0 }
 0x107   :  { %v1075_v40 = vadd.f32 %v1074_v38, %v1073_v37 }
 0x109   :  { %v464_v41 = vadd.f32 %v1075_v40, %v394_v39  ;;  %v968_v40 = vld [vmem:[%s1643_s12] ss:$0 sm:$0xff] }
 0x10b   :  { %v534_v42 = vadd.f32 %v533_v28, %v464_v41  ;;  %v966_v28 = vld [vmem:[%s1641_s9] ss:$0 sm:$0xff] }
 0x10d   :  { %v958_v43 = vmul.f32 -1.442695, %v534_v42 }
 0x10f   :  { %1136 = vpow2.f32 %v958_v43 }
 0x11c   :  { %v1137_v44 = vpop.eup %1136 }
 0x11d   :  { %v541_v45 = vadd.f32 1.0, %v1137_v44 }
 0x11f   :  { %1138 = vrcp.f32 %v541_v45 }
 0x12c   :  { %v1139_v46 = vpop.eup %1138 }
 0x12d   :  { %546 = vst.msk [vmem:[#allocation2] sm:$0xff] %vm545_vm2, %v1139_v46 }
 0x134   :  { %v584_v48 = vld [vmem:[#allocation2 + $0x4] sm:$0xf]  ;;  %v551_v49 = vld [vmem:[#allocation2] sm:$0xf] }
 0x135   :  { %585 = vxpose.xlu0.b32.start.end [1/1] (short) (narrow) %v584_v48, 8 }
 0x139   :  { %552 = vxpose.xlu0.b32.start.end [1/1] (short) (narrow) %v551_v49, 8 }
 0x1b1   :  { %v601_v50 = vpop.trf.xlu0 }
 0x1b2   :  { %v618_v51 = vrot.slane %v601_v50, 3 }
 0x1b5   :  { %v568_v52 = vpop.trf.xlu0 }
 0x1b6   :  { %v621_v54 = vsel %vm620_vm4, %v568_v52, %v618_v51 }
 0x1b7   :  { %1109 = vmatprep.mubr.msk.f32.mxu1 %vm630_vm5, %v621_v54 }
 0x1b8   :  { %1110 = vmatmul.mubr.msk.f32.vlgmr.msra.gmra.mxu1 %vm630_vm5, %v618_v51 }
 0x1b9   :  { %1113 = vmatpush3.msra.mxu1 %v720_v55 }
 0x1ba   :  { %1114 = vmatprep.subr.mxu1 %v719_v57 }
 0x1bb   :  { %1115 = vmatpush3.msra.mxu1 %v719_v57 }
 0x1bc   :  { %1116 = vmatprep.subr.mxu1 %v718_v58 }
 0x1bd   :  { %1117 = vmatpush3.msra.mxu1 %v718_v58 }
 0x1be   :  { %1118 = vmatprep.subr.mxu1 %v717_v59 }
 0x1bf   :  { %1119 = vmatpush3.msra.mxu1 %v717_v59 }
 0x1c0   :  { %1123 = vmatprep.subr.mxu1 %v860_v18 }
 0x278   :  { %v1111_v61 = vpop.f32.mrf.mxu1 }
 0x279   :  { %v712_v62 = vadd.f32 %v1111_v61, %v959_v60 }
 0x27a   :  { %v706_v63 = vpop.f32.mrf.mxu1 }
 0x27b   :  { %v707_v0 = vadd.f32 %v959_v60, %v706_v63  ;;  %v716_v2 = vmax.f32 %v712_v62, 0.0 }
 0x27d   :  { %v715_v1 = vmax.f32 %v707_v0, 0.0 }
 0x27f   :  { %1120 = vmatprep.mubr.msk.f32.mxu1 %vm253_vm0, %v715_v1 }
 0x280   :  { %1121 = vmatmul.mubr.msk.f32.vlgmr.msra.gmra.mxu1 %vm253_vm0, %v716_v2 }
 0x281   :  { %1124 = vmatpush3.msra.mxu1 %v860_v18 }
 0x282   :  { %1125 = vmatprep.subr.mxu1 %v859_v19 }
 0x283   :  { %1126 = vmatpush3.msra.mxu1 %v859_v19 }
 0x284   :  { %1127 = vmatprep.subr.mxu1 %v858_v56 }
 0x285   :  { %1128 = vmatpush3.msra.mxu1 %v858_v56 }
 0x286   :  { %1129 = vmatprep.subr.mxu1 %v857_v20 }
 0x287   :  { %1130 = vmatpush3.msra.mxu1 %v857_v20 }
 0x340   :  { %v1122_v3 = vpop.f32.mrf.mxu1 }
 0x341   :  { %v806_v7 = vadd.f32 %v1122_v3, %v963_v4 }
 0x342   :  { %v800_v5 = vpop.f32.mrf.mxu1 }
 0x343   :  { %v801_v6 = vadd.f32 %v963_v4, %v800_v5  ;;  %v813_v9 = vsel %vm812_vm6, %v806_v7, 0.0 }
 0x345   :  { %v809_v8 = vsel %vm253_vm0, %v801_v6, 0.0 }
 0x346   :  { %810 = vadd.xlane.f32.xlu1 %v809_v8 }
 0x34a   :  { %814 = vadd.xlane.f32.xlu1 %v813_v9 }
 0x3cf   :  { %v811_v32 = vpop.xlane.xlu1 %810 }
 0x3d0   :  { %v817_v10 = vmul.f32 0.03125, %v811_v32 }
 0x3d2   :  { %v819_v11 = vsub.f32 %v801_v6, %v817_v10 }
 0x3d3   :  { %v815_v12 = vpop.xlane.xlu1 %814 }
 0x3d4   :  { %v818_v13 = vmul.f32 0.03125, %v815_v12  ;;  %v821_v14 = vmul.f32 %v819_v11, %v819_v11 }
 0x3d6   :  { %v820_v53 = vsub.f32 %v806_v7, %v818_v13  ;;  %v823_v15 = vsel %vm253_vm0, %v821_v14, 0.0 }
 0x3d7   :  { %824 = vadd.xlane.f32.xlu0 %v823_v15 }
 0x3d8   :  { %v822_v16 = vmul.f32 %v820_v53, %v820_v53 }
 0x3da   :  { %v826_v17 = vsel %vm812_vm6, %v822_v16, 0.0 }
 0x3db   :  { %827 = vadd.xlane.f32.xlu1 %v826_v17 }
 0x460   :  { %v825_v21 = vpop.xlane.xlu0 %824 }
 0x461   :  { %v829_v22 = vmul.f32 0.03125, %v825_v21 }
 0x463   :  { %v831_v23 = vadd.f32 1e-05, %v829_v22 }
 0x464   :  { %v828_v24 = vpop.xlane.xlu1 %827 }
 0x465   :  { %1140 = vrsqrt.f32 %v831_v23  ;;  %v830_v25 = vmul.f32 0.03125, %v828_v24 }
 0x467   :  { %v832_v26 = vadd.f32 1e-05, %v830_v25 }
 0x469   :  { %1142 = vrsqrt.f32 %v832_v26 }
 0x472   :  { %v1141_v27 = vpop.eup %1140 }
 0x473   :  { %v835_v29 = vmul.f32 %v1141_v27, %v819_v11 }
 0x475   :  { %v844_v31 = vmul.f32 %v966_v28, %v835_v29 }
 0x476   :  { %v1143_v33 = vpop.eup %1142 }
 0x477   :  { %v836_v34 = vmul.f32 %v1143_v33, %v820_v53  ;;  %v853_v35 = vadd.f32 %v967_v30, %v844_v31 }
 0x479   :  { %v845_v36 = vmul.f32 %v966_v28, %v836_v34  ;;  %v855_v37 = vmax.f32 %v853_v35, 0.0 }
 0x47b   :  { %v854_v38 = vadd.f32 %v967_v30, %v845_v36  ;;  %1131 = vmatprep.mubr.msk.f32.mxu1 %vm253_vm0, %v855_v37 }
 0x47d   :  { %v856_v39 = vmax.f32 %v854_v38, 0.0 }
 0x47f   :  { %1132 = vmatmul.mubr.msk.f32.vlgmr.msra.gmra.mxu1 %vm253_vm0, %v856_v39 }
 0x53f   :  { %v1133_v41 = vpop.f32.mrf.mxu1 }
 0x540   :  { %v946_v42 = vadd.f32 %v1133_v41, %v968_v40 }
 0x541   :  { %v940_v43 = vpop.f32.mrf.mxu1 }
 0x542   :  { %951 = vst.msk [vmem:[%s1644_s13 + $0x8] sm:$0x3] %vm950_vm7, %v946_v42  ;;  %v941_v44 = vadd.f32 %v968_v40, %v940_v43 }
 0x544   :  { %949 = vst.msk [vmem:[%s1644_s13] sm:$0xff] %vm630_vm5, %v941_v44 }

</bundles_post_ra>
